<compile_context>
chip_gen: v7x
topology: tpu7x:2x2x1
jax: 0.10.0
libtpu: 0.0.40
codegen_flags: <defaults>
</compile_context>

<pallas_src>
import functools

import jax
import jax.numpy as jnp
from jax import lax
from jax.experimental import pallas as pl
from jax.experimental.pallas import tpu as pltpu

S_SCALE = 64.0
MARGIN = 0.35
NORM_EPS = 1e-12  # F.normalize clamps the norm at eps=1e-12


def _round_up(x, m):
    return (x + m - 1) // m * m


def _cosface_kernel(x_ref, w_ref, label_ref, out_ref, wn_ref, *, s, m,
                    tile_b, tile_c):
    c_idx = pl.program_id(0)          # class-tile index (outer, parallel)
    b_idx = pl.program_id(1)          # batch-tile index (inner, arbitrary)

    # Normalize + transpose the weight tile only when it changes (first batch
    # step of each class tile); keep it resident in VMEM scratch as a bf16
    # [D, TC] MXU operand so the hot loop uses the canonical contraction.
    @pl.when(b_idx == 0)
    def _():
        w = w_ref[...].astype(jnp.float32)                              # [TC, D]
        inv_w = lax.rsqrt(
            jnp.maximum(jnp.sum(w * w, axis=-1, keepdims=True),
                        NORM_EPS * NORM_EPS))                           # [TC, 1]
        wn_ref[...] = jnp.transpose(w * inv_w).astype(jnp.bfloat16)     # [D, TC]

    row0 = pl.multiple_of(b_idx * tile_b, tile_b)
    x = x_ref[pl.ds(row0, tile_b), :]                                   # [TB, D]
    xf = x.astype(jnp.float32)
    inv_x = lax.rsqrt(
        jnp.maximum(jnp.sum(xf * xf, axis=-1, keepdims=True),
                    NORM_EPS * NORM_EPS))                               # [TB, 1]

    # bf16 MXU matmul with f32 accumulation; x row-normalization is folded
    # into the epilogue scale so raw x (single bf16 cast) feeds the MXU.
    raw = jnp.dot(x.astype(jnp.bfloat16), wn_ref[...],
                  preferred_element_type=jnp.float32)                   # [TB, TC]

    labels = label_ref[pl.ds(row0, tile_b), :]                          # [TB, 1]
    local = labels - c_idx * tile_c                                     # [TB, 1]
    col = lax.broadcasted_iota(jnp.int32, raw.shape, 1)                 # [TB, TC]
    one_hot = col == local

    # Fused f32 epilogue: s * (cosine - m * one_hot)
    margin = jnp.where(one_hot, jnp.float32(s * m), jnp.float32(0.0))
    out_ref[...] = (raw * (inv_x * jnp.float32(s)) - margin).astype(out_ref.dtype)


def cosface_forward(x, weight, label, *, s=S_SCALE, m=MARGIN,
                    tile_b=256, tile_c=2048, out_dtype=jnp.float32):
    """x: [B, D], weight: [C, D], label: [B] int -> [B, C] out_dtype."""
    B, D = x.shape
    C, D2 = weight.shape
    assert D == D2

    # Hardware-friendly padding: lanes (last dim) -> 128, sublanes -> 8.
    d_pad = _round_up(D, 128)

    tb = _round_up(min(tile_b, _round_up(B, 8)), 8)
    b_pad = _round_up(B, tb)

    tc = _round_up(min(tile_c, _round_up(C, 128)), 128)
    c_pad = _round_up(C, tc)
    # Megacore: keep >= 2 class tiles on the parallel axis when C allows.
    if c_pad // tc < 2 and tc > 128:
        tc = max(128, _round_up(tc // 2, 128))
        c_pad = _round_up(C, tc)

    # Generation-aware VMEM budget (v7x: 64 MiB physical; v5e/v6e: 128 MiB).
    try:
        vmem_cap = int(pltpu.get_tpu_info().vmem_capacity_bytes)
    except Exception:
        vmem_cap = 64 * 1024 * 1024
    vmem_limit = min((vmem_cap * 3) // 4, 96 * 1024 * 1024)

    x_bytes = jnp.dtype(x.dtype).itemsize
    out_bytes = jnp.dtype(out_dtype).itemsize

    def footprint(tb_, tc_, b_pad_):
        w_dbuf = 2 * tc_ * d_pad * 2            # double-buffered bf16 W tile
        wn = d_pad * tc_ * 2                    # bf16 normalized-W scratch
        norm_tmp = 2 * tc_ * d_pad * 4          # f32 temporaries in the when-block
        out = 2 * tb_ * tc_ * out_bytes         # double-buffered output tile
        x_res = 2 * b_pad_ * d_pad * x_bytes    # resident x (conservatively 2x)
        lbl = 2 * b_pad_ * 4
        return w_dbuf + wn + norm_tmp + out + x_res + lbl

    budget = int(vmem_limit * 0.85)
    while footprint(tb, tc, b_pad) > budget and tc > 128:
        tc = max(128, tc // 2)
    c_pad = _round_up(C, tc)
    while footprint(tb, tc, b_pad) > budget and tb > 8:
        tb = max(8, tb // 2)
        b_pad = _round_up(B, tb)

    # Cast W to bf16 for the kernel; only materialize padded copies if needed.
    w_bf = weight.astype(jnp.bfloat16)
    if (c_pad, d_pad) != (C, D):
        w_p = jnp.zeros((c_pad, d_pad), jnp.bfloat16).at[:C, :D].set(w_bf)
    else:
        w_p = w_bf

    if (b_pad, d_pad) != (B, D):
        x_p = jnp.zeros((b_pad, d_pad), x.dtype).at[:B, :D].set(x)
    else:
        x_p = x

    # -1 for padded rows so they never match a class column.
    lbl = jnp.full((b_pad, 1), -1, jnp.int32).at[:B, 0].set(label.astype(jnp.int32))

    grid = (c_pad // tc, b_pad // tb)   # class tiles outer, batch tiles inner

    kernel = functools.partial(_cosface_kernel, s=float(s), m=float(m),
                               tile_b=tb, tile_c=tc)

    out = pl.pallas_call(
        kernel,
        out_shape=jax.ShapeDtypeStruct((b_pad, c_pad), out_dtype),
        grid_spec=pltpu.PrefetchScalarGridSpec(
            num_scalar_prefetch=0,
            grid=grid,
            in_specs=[
                pl.BlockSpec((b_pad, d_pad), lambda c, b: (0, 0)),   # x (resident)
                pl.BlockSpec((tc, d_pad), lambda c, b: (c, 0)),      # W (bf16)
                pl.BlockSpec((b_pad, 1), lambda c, b: (0, 0)),       # labels (resident)
            ],
            out_specs=pl.BlockSpec((tb, tc), lambda c, b: (b, c)),
            scratch_shapes=[pltpu.VMEM((d_pad, tc), jnp.bfloat16)],  # transposed Wn
        ),
        compiler_params=pltpu.CompilerParams(
            # Class axis parallel (megacore sharding); batch axis arbitrary so
            # the cached normalized-weight scratch is always written at b==0
            # before any b>0 step of the same class tile.
            dimension_semantics=("parallel", "arbitrary"),
            vmem_limit_bytes=int(vmem_limit),
        ),
    )(x_p, w_p, lbl)

    return out[:B, :C]


def _xavier_uniform(key, out_features, in_features):
    # matches torch.nn.init.xavier_uniform_ for a 2D weight
    bound = jnp.sqrt(6.0 / (in_features + out_features))
    return jax.random.uniform(
        key, (out_features, in_features), jnp.float32, minval=-bound, maxval=bound
    )


if __name__ == "__main__":
    # TODO(synk): the device_id (multi-GPU model-parallel chunking) path is not
    # translated; this is the single-device forward.
    B = 8
    IN_FEATURES = 64
    OUT_FEATURES = 128

    key = jax.random.PRNGKey(0)
    kx, kw, kl = jax.random.split(key, 3)

    x = jax.random.normal(kx, (B, IN_FEATURES), jnp.float32)
    weight = _xavier_uniform(kw, OUT_FEATURES, IN_FEATURES)
    label = jax.random.randint(kl, (B,), 0, OUT_FEATURES, jnp.int32)

    out = cosface_forward(x, weight, label)
    out = jax.block_until_ready(out)

    # Pure-JAX f32 reference (exact PyTorch semantics).  Kernel uses bf16 MXU
    # operands (W stored in bf16), so compare with a tolerance that absorbs
    # bf16 rounding amplified by s=64.
    xn = x / jnp.maximum(jnp.linalg.norm(x, axis=-1, keepdims=True), NORM_EPS)
    wn = weight / jnp.maximum(jnp.linalg.norm(weight, axis=-1, keepdims=True), NORM_EPS)
    cosine = xn @ wn.T
    one_hot = jax.nn.one_hot(label, OUT_FEATURES, dtype=jnp.float32)
    ref = S_SCALE * (one_hot * (cosine - MARGIN) + (1.0 - one_hot) * cosine)

    assert out.shape == ref.shape
    assert jnp.all(jnp.isfinite(out)), "non-finite values in kernel output"
    assert jnp.max(jnp.abs(out - ref)) < 0.5, "mismatch vs reference"

    print("KERNEL_OK")
</pallas_src>

<mosaic_0001>
module attributes {stable_mosaic.version = 11 : i64} {
  func.func @_cosface_kernel(%arg0: i32, %arg1: i32, %arg2: memref<8x128xf32, #tpu.memory_space<vmem>>, %arg3: memref<128x128xbf16, #tpu.memory_space<vmem>>, %arg4: memref<8x1xi32, #tpu.memory_space<vmem>>, %arg5: memref<8x128xf32, #tpu.memory_space<vmem>>, %arg6: memref<128x128xbf16, #tpu.memory_space<vmem>>) attributes {dimension_semantics = [#tpu.dimension_semantics<parallel>, #tpu.dimension_semantics<arbitrary>], iteration_bounds = array<i64: 1, 1>, scalar_prefetch = 0 : i64, scratch_operands = 1 : i64, tpu.core_type = #tpu.core_type<tc>, window_params = [{pipeline_mode = #tpu.pipeline_mode<synchronous>, transform_indices = @transform_0, window_bounds = array<i64: 8, 128>}, {transform_indices = @transform_1, window_bounds = array<i64: 128, 128>}, {pipeline_mode = #tpu.pipeline_mode<synchronous>, transform_indices = @transform_2, window_bounds = array<i64: 8, 1>}, {transform_indices = @transform_3, window_bounds = array<i64: 8, 128>}]} {
    %c0_i32 = arith.constant 0 : i32
    %0 = arith.cmpi eq, %arg1, %c0_i32 : i32
    %1 = arith.extui %0 : i1 to i32
    %c0_i32_0 = arith.constant 0 : i32
    %2 = arith.cmpi ne, %1, %c0_i32_0 : i32
    scf.if %2 {
      %c0_11 = arith.constant 0 : index
      %c0_12 = arith.constant 0 : index
      %33 = vector.load %arg3[%c0_11, %c0_12] : memref<128x128xbf16, #tpu.memory_space<vmem>>, vector<128x128xbf16>
      %34 = arith.extf %33 : vector<128x128xbf16> to vector<128x128xf32>
      %35 = arith.mulf %34, %34 : vector<128x128xf32>
      %cst_13 = arith.constant dense<0.000000e+00> : vector<128xf32>
      %36 = vector.multi_reduction <add>, %35, %cst_13 [1] : vector<128x128xf32> to vector<128xf32>
      %37 = vector.shape_cast %36 : vector<128xf32> to vector<128x1xf32>
      %cst_14 = arith.constant 1.000000e-24 : f32
      %38 = vector.broadcast %cst_14 : f32 to vector<128x1xf32>
      %39 = arith.maximumf %37, %38 : vector<128x1xf32>
      %40 = math.rsqrt %39 : vector<128x1xf32>
      %41 = vector.broadcast %40 : vector<128x1xf32> to vector<128x128xf32>
      %42 = arith.mulf %34, %41 : vector<128x128xf32>
      %43 = tpu.transpose %42, [1, 0] : vector<128x128xf32> -> vector<128x128xf32>
      %44 = arith.truncf %43 : vector<128x128xf32> to vector<128x128xbf16>
      %c0_15 = arith.constant 0 : index
      %c0_16 = arith.constant 0 : index
      %45 = vector.load %arg6[%c0_15, %c0_16] : memref<128x128xbf16, #tpu.memory_space<vmem>>, vector<128x128xbf16>
      tpu.vector_store %arg6[%c0_15, %c0_16], %44 {strides = array<i32>} : memref<128x128xbf16, #tpu.memory_space<vmem>>, vector<128x128xbf16>,
    } else {
    }
    %c8_i32 = arith.constant 8 : i32
    %3 = arith.muli %arg1, %c8_i32 : i32
    %4 = tpu.assume_multiple %3, 8 : i32
    %5 = arith.index_cast %4 : i32 to index
    %c0 = arith.constant 0 : index
    %6 = vector.load %arg2[%5, %c0] : memref<8x128xf32, #tpu.memory_space<vmem>>, vector<8x128xf32>
    %7 = arith.mulf %6, %6 : vector<8x128xf32>
    %cst = arith.constant dense<0.000000e+00> : vector<8xf32>
    %8 = vector.multi_reduction <add>, %7, %cst [1] : vector<8x128xf32> to vector<8xf32>
    %9 = vector.shape_cast %8 : vector<8xf32> to vector<8x1xf32>
    %cst_1 = arith.constant 1.000000e-24 : f32
    %10 = vector.broadcast %cst_1 : f32 to vector<8x1xf32>
    %11 = arith.maximumf %9, %10 : vector<8x1xf32>
    %12 = math.rsqrt %11 : vector<8x1xf32>
    %13 = arith.truncf %6 : vector<8x128xf32> to vector<8x128xbf16>
    %c0_2 = arith.constant 0 : index
    %c0_3 = arith.constant 0 : index
    %14 = vector.load %arg6[%c0_2, %c0_3] : memref<128x128xbf16, #tpu.memory_space<vmem>>, vector<128x128xbf16>
    %cst_4 = arith.constant dense<0.000000e+00> : vector<8x128xf32>
    %15 = tpu.matmul %13, %14, %cst_4 {dimension_numbers = #tpu.dot_dimension_numbers<[1], [0], [0], [1], [0, 0, 1, 1], [], []>} : vector<8x128xbf16>, vector<128x128xbf16>, vector<8x128xf32> -> vector<8x128xf32>
    %16 = arith.index_cast %4 : i32 to index
    %c0_5 = arith.constant 0 : index
    %17 = vector.load %arg4[%16, %c0_5] : memref<8x1xi32, #tpu.memory_space<vmem>>, vector<8x1xi32>
    %c128_i32 = arith.constant 128 : i32
    %18 = arith.muli %arg0, %c128_i32 : i32
    %19 = vector.broadcast %18 : i32 to vector<8x1xi32>
    %20 = arith.subi %17, %19 : vector<8x1xi32>
    %21 = tpu.iota {dimensions = array<i32: 1>} : vector<8x128xi32>
    %22 = vector.broadcast %20 : vector<8x1xi32> to vector<8x128xi32>
    %23 = arith.cmpi eq, %21, %22 : vector<8x128xi32>
    %cst_6 = arith.constant 2.240000e+01 : f32
    %cst_7 = arith.constant 0.000000e+00 : f32
    %24 = vector.broadcast %cst_6 : f32 to vector<8x128xf32>
    %25 = vector.broadcast %cst_7 : f32 to vector<8x128xf32>
    %26 = arith.select %23, %24, %25 : vector<8x128xi1>, vector<8x128xf32>
    %cst_8 = arith.constant 6.400000e+01 : f32
    %27 = vector.broadcast %cst_8 : f32 to vector<8x1xf32>
    %28 = arith.mulf %12, %27 : vector<8x1xf32>
    %29 = vector.broadcast %28 : vector<8x1xf32> to vector<8x128xf32>
    %30 = arith.mulf %15, %29 : vector<8x128xf32>
    %31 = arith.subf %30, %26 : vector<8x128xf32>
    %c0_9 = arith.constant 0 : index
    %c0_10 = arith.constant 0 : index
    %32 = vector.load %arg5[%c0_9, %c0_10] : memref<8x128xf32, #tpu.memory_space<vmem>>, vector<8x128xf32>
    tpu.vector_store %arg5[%c0_9, %c0_10], %31 {strides = array<i32>} : memref<8x128xf32, #tpu.memory_space<vmem>>, vector<8x128xf32>,
    return
  }
  func.func @transform_0(%arg0: i32, %arg1: i32) -> (i32, i32) {
    %c0_i32 = arith.constant 0 : i32
    %c0_i32_0 = arith.constant 0 : i32
    %c0_i32_1 = arith.constant 0 : i32
    return %c0_i32, %c0_i32_0 : i32, i32
  }
  func.func @transform_1(%arg0: i32, %arg1: i32) -> (i32, i32) {
    %c0_i32 = arith.constant 0 : i32
    %c0_i32_0 = arith.constant 0 : i32
    return %arg0, %c0_i32 : i32, i32
  }
  func.func @transform_2(%arg0: i32, %arg1: i32) -> (i32, i32) {
    %c0_i32 = arith.constant 0 : i32
    %c0_i32_0 = arith.constant 0 : i32
    %c0_i32_1 = arith.constant 0 : i32
    return %c0_i32, %c0_i32_0 : i32, i32
  }
  func.func @transform_3(%arg0: i32, %arg1: i32) -> (i32, i32) {
    %c0_i32 = arith.constant 0 : i32
    return %arg1, %arg0 : i32, i32
  }
}

</mosaic_0001>

<bundles_post_ra>
// kernel: tpu_custom_call.1
= control target key start
LH: loop header
LB: loop body
LE: loop exit
PB: predicated region body
PF: predicated region fallthrough
CT: control target
= control target key end

     0   :  { %8 = vsyncpa [#allocation4], 0  ;;  %s604_s0 = inlined_call_operand.vmem [shape: f32[8,128], index: 0, kind: input, shape index: {}]   ;;  %s605_s1 = inlined_call_operand.hbm [shape: bf16[128,128], index: 1, kind: input, shape index: {}]   ;;  %s606_s2 = inlined_call_operand.vmem [shape: s32[8,1], index: 2, kind: input, shape index: {}]   ;;  %s607_s3 = inlined_call_operand.hbm [shape: f32[8,128], index: 3, kind: output, shape index: {}]  }
   0x1   :  { %9 = vsyncpa [#allocation5], 0  ;;  %s457_s12 = smov [#allocation3]   ;;  %s409_s16 = scalar_lea.hbm %s605_s1, 1024 }
   0x2   :  { %s17_s13 = sshll.u32 %s457_s12, 4  ;;  %p410_p0 = scmp.ne.s32.totalorder %s605_s1, %s409_s16  ;;  %s18_s13 = int_to_ptr.vmem [resolvable:$true] %s17_s13 }
   0x3   :  { %p413_p1 = scmp.lt.u32.totalorder %s409_s16, %s605_s1 }
   0x5   :  { %p415_p2 = pnand %p413_p1, %p410_p0 }
   0x7   :  { %418 = shalt.err (!%p415_p2)
}
   0x8   :  { %s419_s21 = scalar_lea.vmem %s18_s13, 1024  ;;  %p424_p4 = scmp.lt.s32.totalorder %s18_s13, %s18_s13 }
   0x9   :  { %p420_p3 = scmp.ne.s32.totalorder %s18_s13, %s419_s21  ;;  %p425_p5 = scmp.lt.s32.totalorder %s419_s21, %s419_s21 }
   0xb   :  { %p426_p6 = por %p425_p5, %p424_p4 }
   0xd   :  { %p427_p7 = pnand %p426_p6, %p420_p3 }
   0xf   :  { %430 = shalt.err (!%p427_p7)
}
  0x10   :  { %s458_s22 = smov 64   ;;  %s459_s23 = smov 4  }
  0x11   :  { %23 = dma.hbm_to_vmem [thread:$0]  %s605_s1, 1024, %s18_s13, [#allocation4], %s458_s22, %s458_s22, %s459_s23  }
  0x12   :  { %453 = dma.done.wait [#allocation4], 1024  }
  0x13   :  { %454 = vsyncadd [#allocation4], 4294966272  ;;  %v299_v0 = vld [vmem:[#allocation3] sm:$0xff]   ;;  %v330_v1 = vld [vmem:[#allocation3 + $0x8] sm:$0xff]   ;;  %v460_v62 = vmov 0.0   ;;  %vm461_vm0 = vmmov 0  }
  0x14   :  { %v496_v2 = vunpack.c.l.bf16 %v299_v0  ;;  %v498_v3 = vunpack.c.h.bf16 %v299_v0  ;;  %v500_v4 = vunpack.c.l.bf16 %v330_v1  ;;  %v502_v5 = vunpack.c.h.bf16 %v330_v1  ;;  %v331_v6 = vld [vmem:[#allocation3 + $0x10] sm:$0xff]   ;;  %v332_v13 = vld [vmem:[#allocation3 + $0x18] sm:$0xff]   ;;  %v333_v18 = vld [vmem:[#allocation3 + $0x20] sm:$0xff]   ;;  %346 = vmatprep.subr.bf16.mxu0 %v460_v62  ;;  %362 = vmatprep.mubr.msk.bf16.mxu0 %vm461_vm0, %v460_v62 }
  0x15   :  { %v512_v11 = vunpack.c.l.bf16 %v331_v6  ;;  %v514_v12 = vunpack.c.h.bf16 %v331_v6  ;;  %v520_v16 = vunpack.c.l.bf16 %v332_v13  ;;  %v522_v17 = vunpack.c.h.bf16 %v332_v13  ;;  %v334_v23 = vld [vmem:[#allocation3 + $0x28] sm:$0xff]   ;;  %v335_v28 = vld [vmem:[#allocation3 + $0x30] sm:$0xff]   ;;  %v336_v33 = vld [vmem:[#allocation3 + $0x38] sm:$0xff]  }
  0x16   :  { %v66_v7 = vmul.f32 %v496_v2, %v496_v2  ;;  %v68_v8 = vmul.f32 %v500_v4, %v500_v4  ;;  %v67_v9 = vmul.f32 %v498_v3, %v498_v3  ;;  %v69_v10 = vmul.f32 %v502_v5, %v502_v5 }
  0x17   :  { %v70_v14 = vmul.f32 %v512_v11, %v512_v11  ;;  %v71_v15 = vmul.f32 %v514_v12, %v514_v12  ;;  %v72_v19 = vmul.f32 %v520_v16, %v520_v16  ;;  %v73_v20 = vmul.f32 %v522_v17, %v522_v17 }
  0x18   :  { %82 = vadd.xlane.f32.xlu0 %v66_v7  ;;  %86 = vadd.xlane.f32.xlu1 %v68_v8  ;;  %v528_v21 = vunpack.c.l.bf16 %v333_v18  ;;  %v530_v22 = vunpack.c.h.bf16 %v333_v18  ;;  %v536_v26 = vunpack.c.l.bf16 %v334_v23  ;;  %v538_v27 = vunpack.c.h.bf16 %v334_v23 }
  0x19   :  { %v544_v31 = vunpack.c.l.bf16 %v335_v28  ;;  %v546_v32 = vunpack.c.h.bf16 %v335_v28  ;;  %v552_v36 = vunpack.c.l.bf16 %v336_v33  ;;  %v554_v37 = vunpack.c.h.bf16 %v336_v33 }
  0x1a   :  { %v74_v24 = vmul.f32 %v528_v21, %v528_v21  ;;  %v75_v25 = vmul.f32 %v530_v22, %v530_v22  ;;  %v76_v29 = vmul.f32 %v536_v26, %v536_v26  ;;  %v77_v30 = vmul.f32 %v538_v27, %v538_v27 }
  0x1b   :  { %v78_v34 = vmul.f32 %v544_v31, %v544_v31  ;;  %v79_v35 = vmul.f32 %v546_v32, %v546_v32  ;;  %v80_v38 = vmul.f32 %v552_v36, %v552_v36  ;;  %v81_v39 = vmul.f32 %v554_v37, %v554_v37 }
  0x1c   :  { %84 = vadd.xlane.f32.xlu0 %v67_v9  ;;  %88 = vadd.xlane.f32.xlu1 %v69_v10 }
  0x20   :  { %90 = vadd.xlane.f32.xlu0 %v70_v14  ;;  %92 = vadd.xlane.f32.xlu1 %v71_v15 }
  0x24   :  { %94 = vadd.xlane.f32.xlu0 %v72_v19  ;;  %96 = vadd.xlane.f32.xlu1 %v73_v20 }
  0x28   :  { %98 = vadd.xlane.f32.xlu0 %v74_v24  ;;  %100 = vadd.xlane.f32.xlu1 %v75_v25 }
  0x2c   :  { %102 = vadd.xlane.f32.xlu0 %v76_v29  ;;  %104 = vadd.xlane.f32.xlu1 %v77_v30 }
  0x30   :  { %106 = vadd.xlane.f32.xlu0 %v78_v34  ;;  %108 = vadd.xlane.f32.xlu1 %v79_v35 }
  0x34   :  { %110 = vadd.xlane.f32.xlu0 %v80_v38  ;;  %112 = vadd.xlane.f32.xlu1 %v81_v39 }
  0xa5   :  { %v83_v40 = vpop.xlane.xlu0 %82  ;;  %v87_v41 = vpop.xlane.xlu1 %86 }
  0xa6   :  { %v114_v42 = vmax.f32 %v83_v40, 1e-24  ;;  %v116_v43 = vmax.f32 %v87_v41, 1e-24 }
  0xa8   :  { %375 = vrsqrt.f32 %v114_v42 }
  0xa9   :  { %v85_v44 = vpop.xlane.xlu0 %84  ;;  %v89_v45 = vpop.xlane.xlu1 %88  ;;  %377 = vrsqrt.f32 %v116_v43 }
  0xaa   :  { %v115_v46 = vmax.f32 %v85_v44, 1e-24  ;;  %v117_v47 = vmax.f32 %v89_v45, 1e-24 }
  0xac   :  { %379 = vrsqrt.f32 %v115_v46  ;;  %v462_v46 = vmov 0  }
  0xad   :  { %v91_v48 = vpop.xlane.xlu0 %90  ;;  %381 = vrsqrt.f32 %v117_v47  ;;  %v93_v50 = vpop.xlane.xlu1 %92  ;;  %373 = vset.pattern.permute.xlu1 %v462_v46 }
  0xae   :  { %v118_v49 = vmax.f32 %v91_v48, 1e-24  ;;  %v119_v53 = vmax.f32 %v93_v50, 1e-24 }
  0xb0   :  { %383 = vrsqrt.f32 %v118_v49 }
  0xb1   :  { %v95_v55 = vpop.xlane.xlu0 %94  ;;  %385 = vrsqrt.f32 %v119_v53  ;;  %v97_v60 = vpop.xlane.xlu1 %96 }
  0xb2   :  { %v376_v51 = vpop.eup %375  ;;  %v120_v58 = vmax.f32 %v95_v55, 1e-24  ;;  %v121_v63 = vmax.f32 %v97_v60, 1e-24 }
  0xb3   :  { %v146_v52 = vmul.f32 %v376_v51, %v496_v2  ;;  %v378_v54 = vpop.eup %377 }
  0xb4   :  { %v148_v59 = vmul.f32 %v378_v54, %v500_v4  ;;  %387 = vrsqrt.f32 %v120_v58 }
  0xb5   :  { %162 = vxpose.xlu0.b32.start [1/16] %v146_v52, 128  ;;  %v99_v1 = vpop.xlane.xlu0 %98  ;;  %389 = vrsqrt.f32 %v121_v63  ;;  %v101_v7 = vpop.xlane.xlu1 %100 }
  0xb6   :  { %v380_v56 = vpop.eup %379  ;;  %v122_v6 = vmax.f32 %v99_v1, 1e-24  ;;  %v123_v4 = vmax.f32 %v101_v7, 1e-24 }
  0xb7   :  { %v147_v57 = vmul.f32 %v380_v56, %v498_v3  ;;  %v382_v61 = vpop.eup %381 }
  0xb8   :  { %v149_v0 = vmul.f32 %v382_v61, %v502_v5  ;;  %391 = vrsqrt.f32 %v122_v6 }
  0xb9   :  { %163 = vxpose.xlu0.b32.cont [2/16] %v147_v57, 128  ;;  %v103_v10 = vpop.xlane.xlu0 %102  ;;  %393 = vrsqrt.f32 %v123_v4  ;;  %v105_v15 = vpop.xlane.xlu1 %104 }
  0xba   :  { %v384_v2 = vpop.eup %383  ;;  %v124_v14 = vmax.f32 %v103_v10, 1e-24  ;;  %v125_v19 = vmax.f32 %v105_v15, 1e-24  ;;  %v272_v10 = vlaneseq }
  0xbb   :  { %v150_v3 = vmul.f32 %v384_v2, %v512_v11  ;;  %v386_v8 = vpop.eup %385 }
  0xbc   :  { %v151_v9 = vmul.f32 %v386_v8, %v514_v12  ;;  %395 = vrsqrt.f32 %v124_v14 }
  0xbd   :  { %164 = vxpose.xlu0.b32.cont [3/16] %v148_v59, 128  ;;  %v107_v20 = vpop.xlane.xlu0 %106  ;;  %397 = vrsqrt.f32 %v125_v19  ;;  %v109_v25 = vpop.xlane.xlu1 %108 }
  0xbe   :  { %v388_v13 = vpop.eup %387  ;;  %v126_v24 = vmax.f32 %v107_v20, 1e-24  ;;  %v127_v29 = vmax.f32 %v109_v25, 1e-24 }
  0xbf   :  { %v152_v5 = vmul.f32 %v388_v13, %v520_v16  ;;  %v390_v18 = vpop.eup %389  ;;  %v273_v13 = vand.u32 127, %v272_v10 }
  0xc0   :  { %v153_v11 = vmul.f32 %v390_v18, %v522_v17  ;;  %399 = vrsqrt.f32 %v126_v24 }
  0xc1   :  { %165 = vxpose.xlu0.b32.cont [4/16] %v149_v0, 128  ;;  %v111_v30 = vpop.xlane.xlu0 %110  ;;  %401 = vrsqrt.f32 %v127_v29  ;;  %v113_v35 = vpop.xlane.xlu1 %112 }
  0xc2   :  { %v392_v23 = vpop.eup %391  ;;  %v128_v34 = vmax.f32 %v111_v30, 1e-24  ;;  %v129_v39 = vmax.f32 %v113_v35, 1e-24 }
  0xc3   :  { %v154_v12 = vmul.f32 %v392_v23, %v528_v21  ;;  %v394_v28 = vpop.eup %393 }
  0xc4   :  { %v155_v16 = vmul.f32 %v394_v28, %v530_v22  ;;  %403 = vrsqrt.f32 %v128_v34 }
  0xc5   :  { %166 = vxpose.xlu0.b32.cont [5/16] %v150_v3, 128  ;;  %405 = vrsqrt.f32 %v129_v39 }
  0xc6   :  { %v396_v33 = vpop.eup %395 }
  0xc7   :  { %v156_v17 = vmul.f32 %v396_v33, %v536_v26  ;;  %v398_v38 = vpop.eup %397 }
  0xc8   :  { %v157_v21 = vmul.f32 %v398_v38, %v538_v27  ;;  %v212_v27 = vld [vmem:[%s604_s0] sm:$0xff]  ;;  %s463_s0 = smov [#allocation6]  }
  0xc9   :  { %167 = vxpose.xlu0.b32.cont [6/16] %v151_v9, 128  ;;  %v218_v8 = vpack.c.bf16 %v212_v27, %v212_v27 }
  0xca   :  { %v400_v40 = vpop.eup %399 }
  0xcb   :  { %v158_v41 = vmul.f32 %v400_v40, %v544_v31  ;;  %v402_v22 = vpop.eup %401  ;;  %v213_v31 = vmul.f32 %v212_v27, %v212_v27 }
  0xcc   :  { %v159_v42 = vmul.f32 %v402_v22, %v546_v32  ;;  %v268_v32 = vld [vmem:[%s606_s2] sm:$0xff]  ;;  %s289_s2 = sshll.u32 %s463_s0, 4  ;;  %s290_s2 = int_to_ptr.vmem [resolvable:$true] %s289_s2 }
  0xcd   :  { %168 = vxpose.xlu0.b32.cont [7/16] %v152_v5, 128  ;;  %214 = vadd.xlane.f32.xlu1 %v213_v31  ;;  %s431_s29 = scalar_lea.vmem %s290_s2, 128  ;;  %p436_p9 = scmp.lt.s32.totalorder %s290_s2, %s290_s2 }
  0xce   :  { %v404_v43 = vpop.eup %403  ;;  %p432_p8 = scmp.ne.s32.totalorder %s290_s2, %s431_s29  ;;  %p437_p10 = scmp.lt.s32.totalorder %s431_s29, %s431_s29 }
  0xcf   :  { %v160_v26 = vmul.f32 %v404_v43, %v552_v36  ;;  %v406_v44 = vpop.eup %405 }
  0xd0   :  { %v161_v45 = vmul.f32 %v406_v44, %v554_v37  ;;  %p438_p11 = por %p437_p10, %p436_p9 }
  0xd1   :  { %169 = vxpose.xlu0.b32.cont [8/16] %v153_v11, 128 }
  0xd2   :  { %p439_p12 = pnand %p438_p11, %p432_p8 }
  0xd5   :  { %170 = vxpose.xlu0.b32.cont [9/16] %v154_v12, 128 }
  0xd9   :  { %171 = vxpose.xlu0.b32.cont [10/16] %v155_v16, 128 }
  0xdd   :  { %172 = vxpose.xlu0.b32.cont [11/16] %v156_v17, 128 }
  0xde   :  { %275 = vperm.xlu1 %373, %v268_v32  }
  0xe1   :  { %173 = vxpose.xlu0.b32.cont [12/16] %v157_v21, 128 }
  0xe5   :  { %174 = vxpose.xlu0.b32.cont [13/16] %v158_v41, 128 }
  0xe9   :  { %175 = vxpose.xlu0.b32.cont [14/16] %v159_v42, 128 }
  0xed   :  { %176 = vxpose.xlu0.b32.cont [15/16] %v160_v26, 128 }
  0xf1   :  { %177 = vxpose.xlu0.b32.end [16/16] %v161_v45, 128 }
 0x11a   :  { %374 = vset.pattern.permute.xlu0 %v462_v46 }
 0x135   :  { %v178_v36 = vpop.trf.xlu0 }
 0x139   :  { %v179_v37 = vpop.trf.xlu0 }
 0x13a   :  { %v194_v47 = vpack.c.bf16 %v179_v37, %v178_v36 }
 0x13c   :  { %347 = vmatpush3.bf16.msra.mxu0 %v194_v47 }
 0x13d   :  { %v180_v48 = vpop.trf.xlu0  ;;  %348 = vmatprep.subr.bf16.mxu0 %v460_v62 }
 0x141   :  { %v181_v49 = vpop.trf.xlu0 }
 0x142   :  { %v195_v50 = vpack.c.bf16 %v181_v49, %v180_v48 }
 0x144   :  { %349 = vmatpush3.bf16.msra.mxu0 %v195_v50 }
 0x145   :  { %v182_v51 = vpop.trf.xlu0  ;;  %350 = vmatprep.subr.bf16.mxu0 %v460_v62 }
 0x149   :  { %v183_v52 = vpop.trf.xlu0 }
 0x14a   :  { %v196_v53 = vpack.c.bf16 %v183_v52, %v182_v51 }
 0x14c   :  { %351 = vmatpush3.bf16.msra.mxu0 %v196_v53 }
 0x14d   :  { %v184_v54 = vpop.trf.xlu0  ;;  %352 = vmatprep.subr.bf16.mxu0 %v460_v62 }
 0x151   :  { %v185_v55 = vpop.trf.xlu0 }
 0x152   :  { %v197_v56 = vpack.c.bf16 %v185_v55, %v184_v54 }
 0x154   :  { %353 = vmatpush3.bf16.msra.mxu0 %v197_v56 }
 0x155   :  { %v186_v57 = vpop.trf.xlu0  ;;  %354 = vmatprep.subr.bf16.mxu0 %v460_v62 }
 0x159   :  { %v187_v58 = vpop.trf.xlu0 }
 0x15a   :  { %v198_v59 = vpack.c.bf16 %v187_v58, %v186_v57  ;;  %v215_v4 = vpop.xlane.xlu1 %214 }
 0x15b   :  { %v216_v9 = vmax.f32 %v215_v4, 1e-24 }
 0x15c   :  { %355 = vmatpush3.bf16.msra.mxu0 %v198_v59 }
 0x15d   :  { %v188_v60 = vpop.trf.xlu0  ;;  %356 = vmatprep.subr.bf16.mxu0 %v460_v62  ;;  %407 = vrsqrt.f32 %v216_v9 }
 0x15e   :  { %v276_v5 = vpop.permute.xlu1 %275 }
 0x15f   :  { %vm277_vm1 = vcmp.eq.s32.totalorder %v273_v13, %v276_v5 }
 0x160   :  { %v278_v18 = vsel %vm277_vm1, 22.4, %v460_v62 }
 0x161   :  { %v189_v61 = vpop.trf.xlu0 }
 0x162   :  { %v199_v63 = vpack.c.bf16 %v189_v61, %v188_v60 }
 0x164   :  { %357 = vmatpush3.bf16.msra.mxu0 %v199_v63 }
 0x165   :  { %v190_v0 = vpop.trf.xlu0  ;;  %358 = vmatprep.subr.bf16.mxu0 %v460_v62 }
 0x167   :  { %v408_v14 = vpop.eup %407 }
 0x168   :  { %v279_v15 = vmul.f32 64.0, %v408_v14 }
 0x169   :  { %v191_v1 = vpop.trf.xlu0 }
 0x16a   :  { %v200_v2 = vpack.c.bf16 %v191_v1, %v190_v0 }
 0x16c   :  { %359 = vmatpush3.bf16.msra.mxu0 %v200_v2 }
 0x16d   :  { %v192_v6 = vpop.trf.xlu0  ;;  %360 = vmatprep.subr.bf16.mxu0 %v460_v62 }
 0x171   :  { %v193_v3 = vpop.trf.xlu0 }
 0x172   :  { %v201_v7 = vpack.c.bf16 %v193_v3, %v192_v6 }
 0x174   :  { %361 = vmatpush3.bf16.msra.mxu0 %v201_v7 }
 0x177   :  { %363 = vmatmul.mubr.bf16.vlgmr.msra.gmra.mrb[0].mxu0 %v218_v8 }
 0x24a   :  { %v261_v19 = vpop.f32.mrb[0].mxu0 }
 0x24b   :  { %v280_v11 = vmul.f32 %v279_v15, %v261_v19  ;;  %v364_v20 = vpop.f32.mrb[1].mxu0 }
 0x24c   :  { %v264_v23 = vpop.f32.mrb[2].mxu0 }
 0x24d   :  { %v281_v24 = vsub.f32 %v280_v11, %v278_v18  ;;  %v365_v12 = vpop.f32.mrb[3].mxu0 }
 0x24f   :  { %282 = vst [vmem:[#allocation6] sm:$0xff] %v281_v24 }
 0x250   :  { %442 = shalt.err (!%p439_p12)
}
 0x251   :  { %s443_s5 = scalar_lea.hbm %s607_s3, 128 }
 0x252   :  { %p444_p13 = scmp.ne.s32.totalorder %s607_s3, %s443_s5  ;;  %p447_p0 = scmp.lt.u32.totalorder %s443_s5, %s607_s3 }
 0x254   :  { %p449_p1 = pnand %p447_p0, %p444_p13 }
 0x256   :  { %452 = shalt.err (!%p449_p1)
}
 0x257   :  { %292 = dma.vmem_to_hbm [thread:$0]  %s290_s2, 128, %s607_s3, [#allocation5]  }
 0x258   :  { %455 = dma.done.wait [#allocation5], 128  }
 0x259   :  { %456 = vsyncadd [#allocation5], 4294967168 }
 0x25a   :  { %296 = vsyncpa [#allocation4], 1 }
 0x25b   :  { %297 = vsyncpa [#allocation5], 1 }

</bundles_post_ra>
